<compile_context>
chip_gen: v6e
topology: v6e:2x2x1
jax: 0.10.0
libtpu: 0.0.40
codegen_flags: <defaults>
</compile_context>

<pallas_src>
import functools

import jax
import jax.numpy as jnp
from jax import lax
from jax.experimental import pallas as pl
from jax.experimental.pallas import tpu as pltpu


def _conv_block_kernel(x_ref, w_ref, b_ref, o_ref, *, H, W, Cin, Cout):
    # x_ref : (1, Cin, H*W)   one batch element, channels on sublanes, flat spatial on lanes
    # w_ref : (Cout, 9*Cin)   weights, column order = (kh, kw, c)
    # b_ref : (Cout, 1)       bias column
    # o_ref : (1, Cout, H*W)  lane-dense output block
    HW = H * W
    x = x_ref[0]  # (Cin, HW)

    # Position of each column within its length-W row.
    w_pos = lax.broadcasted_iota(jnp.int32, (Cin, HW), 1) % W

    # W-direction circular shifts (wrap stays inside each length-W row).
    # jnp.roll(v, s, axis=1)[i] == v[(i - s) mod HW]; a flat roll is correct
    # everywhere except at the row boundary, where we select the wrapped value.
    x_wm1 = jnp.where(w_pos == 0,                       # read (w - 1) mod W
                      jnp.roll(x, 1 - W, axis=1),
                      jnp.roll(x, 1, axis=1))
    x_wp1 = jnp.where(w_pos == W - 1,                   # read (w + 1) mod W
                      jnp.roll(x, W - 1, axis=1),
                      jnp.roll(x, -1, axis=1))

    # Rows ordered (kw, c): kw taps {-1, 0, +1}, Cin channels each.
    base = jnp.concatenate([x_wm1, x, x_wp1], axis=0)   # (3*Cin, HW)

    # H-direction circular shifts are exact flat rolls by +-W in the flattened
    # layout.  Rows ordered (kh, kw, c) -> matches w_ref column order.
    patches = jnp.concatenate(
        [jnp.roll(base, W, axis=1), base, jnp.roll(base, -W, axis=1)],
        axis=0,
    )                                                   # (9*Cin, HW)

    # Single im2col matmul on the MXU: (Cout, 9*Cin) @ (9*Cin, HW).
    acc = jnp.dot(w_ref[...], patches, preferred_element_type=jnp.float32)
    acc = acc + b_ref[...].astype(acc.dtype)            # (Cout,1) bcast over lanes
    acc = jnp.maximum(acc, 0.0)                         # ReLU
    o_ref[0] = acc.astype(o_ref.dtype)


def conv_block_forward(x_nchw, weight_oihw, bias):
    """Forward pass of ConvBlock.

    x_nchw      : (N, Cin, H, W)
    weight_oihw : (Cout, Cin, 3, 3)   (PyTorch layout)
    bias        : (Cout,)
    returns     : (N, Cout, H, W)
    """
    N, Cin, H, W = x_nchw.shape
    Cout = weight_oihw.shape[0]
    HW = H * W

    # Metadata-only reshape (NCHW is contiguous): no HBM copies, no transposes.
    x_flat = x_nchw.reshape(N, Cin, HW)
    # Tiny weight re-layout: (O,I,KH,KW) -> (O,KH,KW,I) -> (O, 9*Cin).
    w_mat = jnp.transpose(weight_oihw, (0, 2, 3, 1)).reshape(Cout, 9 * Cin)
    b_col = bias.reshape(Cout, 1)

    kernel = functools.partial(_conv_block_kernel, H=H, W=W, Cin=Cin, Cout=Cout)

    out_flat = pl.pallas_call(
        kernel,
        out_shape=jax.ShapeDtypeStruct((N, Cout, HW), x_nchw.dtype),
        grid_spec=pltpu.PrefetchScalarGridSpec(
            num_scalar_prefetch=0,
            grid=(N,),  # one batch element per step; "parallel" -> both TCs on v7x
            in_specs=[
                pl.BlockSpec((1, Cin, HW), lambda n: (n, 0, 0)),
                pl.BlockSpec((Cout, 9 * Cin), lambda n: (0, 0)),
                pl.BlockSpec((Cout, 1), lambda n: (0, 0)),
            ],
            out_specs=pl.BlockSpec((1, Cout, HW), lambda n: (n, 0, 0)),
        ),
        compiler_params=pltpu.CompilerParams(
            dimension_semantics=("parallel",),
        ),
    )(x_flat, w_mat, b_col)

    # Metadata-only reshape back to NCHW.
    return out_flat.reshape(N, Cout, H, W)


def _reference_forward(x_nchw, weight_oihw, bias):
    """Pure-JAX reference (same semantics) for validation."""
    x = jnp.concatenate([x_nchw[:, :, -1:, :], x_nchw, x_nchw[:, :, :1, :]], axis=2)
    x = jnp.concatenate([x[:, :, :, -1:], x, x[:, :, :, :1]], axis=3)
    y = lax.conv_general_dilated(
        x.astype(jnp.float32),
        weight_oihw.astype(jnp.float32),
        window_strides=(1, 1),
        padding="VALID",
        dimension_numbers=("NCHW", "OIHW", "NCHW"),
    )
    y = y + bias.reshape(1, -1, 1, 1)
    return jnp.maximum(y, 0.0).astype(x_nchw.dtype)


if __name__ == "__main__":
    # Small shapes consistent with the module: batch=2, in_channels=4,
    # out_channels=8, spatial 16x16.
    N, Cin, Cout, H, W = 2, 4, 8, 16, 16

    key = jax.random.PRNGKey(0)
    kx, kw, kb = jax.random.split(key, 3)

    x = jax.random.normal(kx, (N, Cin, H, W), dtype=jnp.float32)
    # Deterministic "init" mimicking Conv2d default scale (kaiming-uniform-ish).
    fan_in = Cin * 3 * 3
    bound = 1.0 / jnp.sqrt(fan_in)
    weight = jax.random.uniform(kw, (Cout, Cin, 3, 3), jnp.float32, -bound, bound)
    bias = jax.random.uniform(kb, (Cout,), jnp.float32, -bound, bound)

    fwd = jax.jit(conv_block_forward)
    out = fwd(x, weight, bias)
    out = jax.block_until_ready(out)

    ref = _reference_forward(x, weight, bias)
    assert out.shape == (N, Cout, H, W)
    assert jnp.allclose(out, ref, atol=1e-4, rtol=1e-4)

    print("KERNEL_OK")
</pallas_src>

<mosaic_0001>
module attributes {stable_mosaic.version = 11 : i64} {
  func.func @_conv_block_kernel(%arg0: i32, %arg1: memref<1x4x256xf32, #tpu.memory_space<vmem>>, %arg2: memref<8x36xf32, #tpu.memory_space<vmem>>, %arg3: memref<8x1xf32, #tpu.memory_space<vmem>>, %arg4: memref<1x8x256xf32, #tpu.memory_space<vmem>>) attributes {dimension_semantics = [#tpu.dimension_semantics<parallel>], iteration_bounds = array<i64: 2>, scalar_prefetch = 0 : i64, scratch_operands = 0 : i64, tpu.core_type = #tpu.core_type<tc>, window_params = [{transform_indices = @transform_0, window_bounds = array<i64: 1, 4, 256>}, {pipeline_mode = #tpu.pipeline_mode<synchronous>, transform_indices = @transform_1, window_bounds = array<i64: 8, 36>}, {pipeline_mode = #tpu.pipeline_mode<synchronous>, transform_indices = @transform_2, window_bounds = array<i64: 8, 1>}, {transform_indices = @transform_3, window_bounds = array<i64: 1, 8, 256>}]} {
    %c0 = arith.constant 0 : index
    %c0_0 = arith.constant 0 : index
    %c0_1 = arith.constant 0 : index
    %0 = vector.load %arg1[%c0, %c0_0, %c0_1] : memref<1x4x256xf32, #tpu.memory_space<vmem>>, vector<1x4x256xf32>
    %1 = vector.shape_cast %0 : vector<1x4x256xf32> to vector<4x256xf32>
    %2 = tpu.iota {dimensions = array<i32: 1>} : vector<4x256xi32>
    %c16_i32 = arith.constant 16 : i32
    %c0_i32 = arith.constant 0 : i32
    %3 = arith.cmpi eq, %c16_i32, %c0_i32 : i32
    %c1_i32 = arith.constant 1 : i32
    %4 = arith.select %3, %c1_i32, %c16_i32 : i32
    %5 = vector.broadcast %4 : i32 to vector<4x256xi32>
    %6 = arith.remsi %2, %5 : vector<4x256xi32>
    %c0_i32_2 = arith.constant 0 : i32
    %7 = vector.broadcast %c0_i32_2 : i32 to vector<4x256xi32>
    %8 = arith.cmpi ne, %6, %7 : vector<4x256xi32>
    %c0_i32_3 = arith.constant 0 : i32
    %9 = vector.broadcast %c0_i32_3 : i32 to vector<4x256xi32>
    %10 = arith.cmpi slt, %6, %9 : vector<4x256xi32>
    %c0_i32_4 = arith.constant 0 : i32
    %11 = arith.cmpi slt, %4, %c0_i32_4 : i32
    %12 = vector.broadcast %11 : i1 to vector<4x256xi1>
    %13 = vector.broadcast %12 : vector<4x256xi1> to vector<4x256xi1>
    %14 = arith.xori %10, %13 : vector<4x256xi1>
    %15 = arith.andi %14, %8 : vector<4x256xi1>
    %16 = vector.broadcast %4 : i32 to vector<4x256xi32>
    %17 = arith.addi %6, %16 : vector<4x256xi32>
    %18 = arith.select %15, %17, %6 : vector<4x256xi1>, vector<4x256xi32>
    %c0_i32_5 = arith.constant 0 : i32
    %19 = vector.broadcast %c0_i32_5 : i32 to vector<4x256xi32>
    %20 = arith.cmpi eq, %18, %19 : vector<4x256xi32>
    %21 = vector.extract_strided_slice %1 {offsets = [0, 15], sizes = [4, 241], strides = [1, 1]} : vector<4x256xf32> to vector<4x241xf32>
    %22 = vector.extract_strided_slice %1 {offsets = [0, 0], sizes = [4, 15], strides = [1, 1]} : vector<4x256xf32> to vector<4x15xf32>
    %23 = tpu.concatenate %21, %22 in 1 : vector<4x241xf32>, vector<4x15xf32> -> vector<4x256xf32>
    %24 = vector.extract_strided_slice %1 {offsets = [0, 255], sizes = [4, 1], strides = [1, 1]} : vector<4x256xf32> to vector<4x1xf32>
    %25 = vector.extract_strided_slice %1 {offsets = [0, 0], sizes = [4, 255], strides = [1, 1]} : vector<4x256xf32> to vector<4x255xf32>
    %26 = tpu.concatenate %24, %25 in 1 : vector<4x1xf32>, vector<4x255xf32> -> vector<4x256xf32>
    %27 = arith.select %20, %23, %26 : vector<4x256xi1>, vector<4x256xf32>
    %c15_i32 = arith.constant 15 : i32
    %28 = vector.broadcast %c15_i32 : i32 to vector<4x256xi32>
    %29 = arith.cmpi eq, %18, %28 : vector<4x256xi32>
    %30 = vector.extract_strided_slice %1 {offsets = [0, 241], sizes = [4, 15], strides = [1, 1]} : vector<4x256xf32> to vector<4x15xf32>
    %31 = vector.extract_strided_slice %1 {offsets = [0, 0], sizes = [4, 241], strides = [1, 1]} : vector<4x256xf32> to vector<4x241xf32>
    %32 = tpu.concatenate %30, %31 in 1 : vector<4x15xf32>, vector<4x241xf32> -> vector<4x256xf32>
    %33 = vector.extract_strided_slice %1 {offsets = [0, 1], sizes = [4, 255], strides = [1, 1]} : vector<4x256xf32> to vector<4x255xf32>
    %34 = vector.extract_strided_slice %1 {offsets = [0, 0], sizes = [4, 1], strides = [1, 1]} : vector<4x256xf32> to vector<4x1xf32>
    %35 = tpu.concatenate %33, %34 in 1 : vector<4x255xf32>, vector<4x1xf32> -> vector<4x256xf32>
    %36 = arith.select %29, %32, %35 : vector<4x256xi1>, vector<4x256xf32>
    %37 = tpu.concatenate %27, %1, %36 in 0 : vector<4x256xf32>, vector<4x256xf32>, vector<4x256xf32> -> vector<12x256xf32>
    %38 = vector.extract_strided_slice %37 {offsets = [0, 240], sizes = [12, 16], strides = [1, 1]} : vector<12x256xf32> to vector<12x16xf32>
    %39 = vector.extract_strided_slice %37 {offsets = [0, 0], sizes = [12, 240], strides = [1, 1]} : vector<12x256xf32> to vector<12x240xf32>
    %40 = tpu.concatenate %38, %39 in 1 : vector<12x16xf32>, vector<12x240xf32> -> vector<12x256xf32>
    %41 = vector.extract_strided_slice %37 {offsets = [0, 16], sizes = [12, 240], strides = [1, 1]} : vector<12x256xf32> to vector<12x240xf32>
    %42 = vector.extract_strided_slice %37 {offsets = [0, 0], sizes = [12, 16], strides = [1, 1]} : vector<12x256xf32> to vector<12x16xf32>
    %43 = tpu.concatenate %41, %42 in 1 : vector<12x240xf32>, vector<12x16xf32> -> vector<12x256xf32>
    %44 = tpu.concatenate %40, %37, %43 in 0 : vector<12x256xf32>, vector<12x256xf32>, vector<12x256xf32> -> vector<36x256xf32>
    %c0_6 = arith.constant 0 : index
    %c0_7 = arith.constant 0 : index
    %45 = vector.load %arg2[%c0_6, %c0_7] : memref<8x36xf32, #tpu.memory_space<vmem>>, vector<8x36xf32>
    %cst = arith.constant dense<0.000000e+00> : vector<8x256xf32>
    %46 = tpu.matmul %45, %44, %cst {dimension_numbers = #tpu.dot_dimension_numbers<[1], [0], [0], [1], [0, 0, 1, 1], [], []>} : vector<8x36xf32>, vector<36x256xf32>, vector<8x256xf32> -> vector<8x256xf32>
    %c0_8 = arith.constant 0 : index
    %c0_9 = arith.constant 0 : index
    %47 = vector.load %arg3[%c0_8, %c0_9] : memref<8x1xf32, #tpu.memory_space<vmem>>, vector<8x1xf32>
    %48 = vector.broadcast %47 : vector<8x1xf32> to vector<8x256xf32>
    %49 = arith.addf %46, %48 : vector<8x256xf32>
    %cst_10 = arith.constant 0.000000e+00 : f32
    %50 = vector.broadcast %cst_10 : f32 to vector<8x256xf32>
    %51 = arith.maximumf %49, %50 : vector<8x256xf32>
    %c0_11 = arith.constant 0 : index
    %c0_12 = arith.constant 0 : index
    %c0_13 = arith.constant 0 : index
    %52 = vector.load %arg4[%c0_11, %c0_12, %c0_13] : memref<1x8x256xf32, #tpu.memory_space<vmem>>, vector<1x8x256xf32>
    %53 = vector.shape_cast %52 : vector<1x8x256xf32> to vector<8x256xf32>
    %54 = vector.shape_cast %51 : vector<8x256xf32> to vector<1x8x256xf32>
    tpu.vector_store %arg4[%c0_11, %c0_12, %c0_13], %54 {strides = array<i32>} : memref<1x8x256xf32, #tpu.memory_space<vmem>>, vector<1x8x256xf32>,
    return
  }
  func.func @transform_0(%arg0: i32) -> (i32, i32, i32) {
    %c0_i32 = arith.constant 0 : i32
    %c0_i32_0 = arith.constant 0 : i32
    %c0_i32_1 = arith.constant 0 : i32
    return %arg0, %c0_i32, %c0_i32_0 : i32, i32, i32
  }
  func.func @transform_1(%arg0: i32) -> (i32, i32) {
    %c0_i32 = arith.constant 0 : i32
    %c0_i32_0 = arith.constant 0 : i32
    %c0_i32_1 = arith.constant 0 : i32
    return %c0_i32, %c0_i32_0 : i32, i32
  }
  func.func @transform_2(%arg0: i32) -> (i32, i32) {
    %c0_i32 = arith.constant 0 : i32
    %c0_i32_0 = arith.constant 0 : i32
    %c0_i32_1 = arith.constant 0 : i32
    return %c0_i32, %c0_i32_0 : i32, i32
  }
  func.func @transform_3(%arg0: i32) -> (i32, i32, i32) {
    %c0_i32 = arith.constant 0 : i32
    %c0_i32_0 = arith.constant 0 : i32
    %c0_i32_1 = arith.constant 0 : i32
    return %arg0, %c0_i32, %c0_i32_0 : i32, i32, i32
  }
}

</mosaic_0001>

<bundles_post_ra>
// kernel: conv_block_forward.1
= control target key start
LH: loop header
LB: loop body
LE: loop exit
PB: predicated region body
PF: predicated region fallthrough
CT: control target
= control target key end

     0   :  { %s524_s12 = smov 0   ;;  %s559_s0 = inlined_call_operand.vmem [shape: f32[2,4,256], index: 0, kind: input, shape index: {}]   ;;  %s560_s1 = inlined_call_operand.vmem [shape: f32[8,36], index: 1, kind: input, shape index: {}]   ;;  %s561_s2 = inlined_call_operand.vmem [shape: f32[8,1], index: 2, kind: input, shape index: {}]   ;;  %s562_s3 = inlined_call_operand.vmem [shape: f32[2,8,256], index: 3, kind: output, shape index: {}]  }
   0x1 LB: > { %s453_s13 = sadd.s32 4294967295, %s494_s12   ;;  %p457_p0 = scmp.ge.s32.totalorder %s494_s12, 1  ;;  %s494_s12 = sphi %s524_s12, %s13_s12  }
   0x2   : > { %p137_p1 = scmp.lt.s32.totalorder %s494_s12, 3 }
   0x4   : > { %p138_p2 = pnand %p457_p0, %p137_p1 }
   0x5   : > { %p161_p3 = scmp.lt.s32.totalorder (!%p138_p2), %s453_s13, 1  ;;  %s496_s18 = smov (!%p138_p2), 127  }
   0x6   : > { %141 = sbr.rel (%p138_p2) target bundleno = 471 (0x1d7), region = 32  ;;  %s497_s19 = smov (!%p138_p2), 15  }
   0x7   : > { %s498_s20 = smov (!%p138_p2), 113   ;;  %s499_s21 = smov (!%p138_p2), 1  }
   0x8   : > { %s500_s22 = smov (!%p138_p2), 112   ;;  %s503_s23 = smov (!%p138_p2), 16  }
   0xb   : > { %s564_s13 = smov (!%p161_p3, %s453_s13), 1  ;;  %v172_v2 = vlaneseq  ;;  %vm241_vm0 = vcmask 1039360   ;;  %vm232_vm1 = vcmask 121856   ;;  %vm207_vm4 = vcmask 924672   ;;  %v308_v38 = vld [vmem:[%s561_s2] sm:$0xff] }
   0xc   : > { %s467_s14 = sshll.u32 %s564_s13, 3  ;;  %vm218_vm5 = vcmask 7168   ;;  %vm251_vm8 = vcmask 1043456   ;;  %v501_v26 = vmov 0.0   ;;  %v502_v31 = vmov 0   ;;  %v307_v57 = vld [vmem:[%s560_s1] sm:$0xff] }
   0xd   : > { %s165_s17 = scalar_lea.vmem %s559_s0, %s467_s14  ;;  %v173_v3 = vand.u32 127, %v172_v2  ;;  %387 = vmatprep.mubr.f32.mxu0 %v501_v26  ;;  %485 = vset.pattern.permute.xlu0 %v502_v31  ;;  %vm285_vm9 = vcmask 916480   ;;  %vm268_vm10 = vcmask 130048   ;;  %vm314_vm11 = vcmask 293888   ;;  %s468_s28 = sshll.u32 %s564_s13, 4 }
   0xe   : > { %v171_v0 = vld [vmem:[%s165_s17] sm:$0xff]  ;;  %s170_s4 = scalar_lea.vmem %s562_s3, %s468_s28 }
   0xf   : > { %237 = vrot.lane.b32.xlu1 %v171_v0, %s496_s18  ;;  %230 = vrot.lane.b32.xlu0 %v171_v0, %s497_s19  ;;  %v202_v1 = vcombine.high %v171_v0, %v171_v0  ;;  %v174_v4 = vadd.s32 128, %v173_v3  ;;  %v179_v7 = vand.u32 15, %v173_v3  ;;  %v249_v19 = vcombine.low %v171_v0, %v171_v0 }
  0x11   : > { %v186_v8 = vand.u32 15, %v174_v4  ;;  %vm225_vm2 = vcmp.eq.s32.totalorder %v179_v7, 15  ;;  %vm199_vm6 = vcmp.eq.s32.totalorder %v179_v7, 0 }
  0x13   : > { %203 = vrot.lane.b32.xlu0 %v171_v0, %s498_s20  ;;  %239 = vrot.lane.b32.xlu1 %v202_v1, %s496_s18  ;;  %vm226_vm3 = vcmp.eq.s32.totalorder %v186_v8, 15  ;;  %vm200_vm7 = vcmp.eq.s32.totalorder %v186_v8, 0 }
  0x17   : > { %205 = vrot.lane.b32.xlu1 %v202_v1, %s498_s20  ;;  %227 = vrot.lane.b32.xlu0 %v202_v1, %s497_s19 }
  0x1b   : > { %216 = vrot.lane.b32.xlu1 %v171_v0, %s499_s21  ;;  %213 = vrot.lane.b32.xlu0 %v202_v1, %s499_s21 }
  0x81   : > { %v238_v5 = vpop.permute.xlu1 %237  ;;  %v231_v6 = vpop.permute.xlu0 %230 }
  0x85   : > { %v204_v9 = vpop.permute.xlu0 %203  ;;  %v240_v10 = vpop.permute.xlu1 %239 }
  0x86   : > { %v242_v13 = vsel %vm241_vm0, %v238_v5, %v240_v10  ;;  %v246_v14 = vsel %vm241_vm0, %v240_v10, %v238_v5 }
  0x89   : > { %v206_v11 = vpop.permute.xlu1 %205  ;;  %v228_v12 = vpop.permute.xlu0 %227 }
  0x8a   : > { %v233_v15 = vsel %vm232_vm1, %v231_v6, %v228_v12  ;;  %v236_v16 = vsel %vm232_vm1, %v228_v12, %v231_v6  ;;  %v208_v22 = vsel %vm207_vm4, %v204_v9, %v206_v11  ;;  %v212_v23 = vsel %vm207_vm4, %v206_v11, %v204_v9 }
  0x8b   : > { %v247_v17 = vsel %vm225_vm2, %v236_v16, %v242_v13  ;;  %v248_v18 = vsel %vm226_vm3, %v233_v15, %v246_v14 }
  0x8c   : > { %281 = vrot.lane.b32.xlu0 %v247_v17, %s500_s22  ;;  %283 = vrot.lane.b32.xlu1 %v248_v18, %s500_s22  ;;  %v297_v32 = vrot.slane %v247_v17, 4  ;;  %v299_v33 = vrot.slane %v248_v18, 4 }
  0x8d   : > { %v217_v20 = vpop.permute.xlu1 %216  ;;  %v214_v21 = vpop.permute.xlu0 %213 }
  0x8e   : > { %v219_v24 = vsel %vm218_vm5, %v217_v20, %v214_v21  ;;  %v222_v25 = vsel %vm218_vm5, %v214_v21, %v217_v20 }
  0x8f   : > { %v223_v27 = vsel %vm199_vm6, %v208_v22, %v222_v25  ;;  %v224_v28 = vsel %vm200_vm7, %v212_v23, %v219_v24 }
  0x90   : > { %v252_v29 = vsel %vm251_vm8, %v223_v27, %v249_v19  ;;  %v253_v30 = vsel %vm251_vm8, %v224_v28, %v171_v0 }
  0x91   : > { %277 = vrot.lane.b32.xlu0 %v252_v29, %s500_s22  ;;  %v295_v34 = vrot.slane %v252_v29, 4  ;;  %279 = vrot.lane.b32.xlu1 %v253_v30, %s500_s22  ;;  %v296_v35 = vrot.slane %v253_v30, 4 }
  0x93   : > { %v300_v36 = vsel %vm251_vm8, %v296_v35, %v299_v33  ;;  %v298_v37 = vsel %vm251_vm8, %v295_v34, %v297_v32 }
  0x95   : > { %258 = vrot.lane.b32.xlu0 %v248_v18, %s503_s23  ;;  %266 = vrot.lane.b32.xlu1 %v247_v17, %s503_s23 }
  0x99   : > { %256 = vrot.lane.b32.xlu0 %v253_v30, %s503_s23  ;;  %264 = vrot.lane.b32.xlu1 %v252_v29, %s503_s23 }
  0x9d   : > { %311 = vperm.xlu0 %485, %v308_v38  }
  0xfe   : > { %v284_v39 = vpop.permute.xlu1 %283  ;;  %v282_v40 = vpop.permute.xlu0 %281 }
  0xff   : > { %v294_v41 = vsel %vm285_vm9, %v284_v39, %v282_v40  ;;  %v287_v42 = vsel %vm285_vm9, %v282_v40, %v284_v39 }
 0x100   : > { %462 = vmatprep.subr.msk.mxu0 %vm251_vm8, %v294_v41 }
 0x101   : > { %463 = vmatpush1.msk.msra.mxu0 %vm251_vm8, %v287_v42 }
 0x103   : > { %v280_v43 = vpop.permute.xlu1 %279  ;;  %v278_v44 = vpop.permute.xlu0 %277 }
 0x104   : > { %v293_v45 = vsel %vm285_vm9, %v280_v43, %v278_v44  ;;  %v286_v46 = vsel %vm285_vm9, %v278_v44, %v280_v43 }
 0x105   : > { %347 = vmatprep.subr.mxu0 %v293_v45 }
 0x106   : > { %348 = vmatpush1.msra.mxu0 %v286_v46 }
 0x107   : > { %v267_v47 = vpop.permute.xlu1 %266  ;;  %349 = vmatprep.subr.mxu0 %v300_v36  ;;  %v259_v48 = vpop.permute.xlu0 %258 }
 0x108   : > { %v270_v49 = vsel %vm268_vm10, %v267_v47, %v259_v48  ;;  %v276_v50 = vsel %vm268_vm10, %v259_v48, %v267_v47  ;;  %350 = vmatpush1.msra.mxu0 %v298_v37 }
 0x109   : > { %v306_v51 = vsel %vm251_vm8, %v270_v49, %v296_v35  ;;  %v305_v52 = vsel %vm251_vm8, %v276_v50, %v295_v34 }
 0x10a   : > { %351 = vmatprep.subr.mxu0 %v306_v51 }
 0x10b   : > { %v265_v53 = vpop.permute.xlu1 %264  ;;  %352 = vmatpush1.msra.mxu0 %v305_v52  ;;  %v257_v54 = vpop.permute.xlu0 %256 }
 0x10c   : > { %v269_v55 = vsel %vm268_vm10, %v265_v53, %v257_v54  ;;  %v275_v56 = vsel %vm268_vm10, %v257_v54, %v265_v53 }
 0x10d   : > { %353 = vmatprep.subr.mxu0 %v269_v55 }
 0x10e   : > { %354 = vmatpush1.msra.mxu0 %v275_v56 }
 0x10f   : > { %464 = vmatmul.mubr.msk.f32.vlgmr.msra.gmra.mxu0 %vm314_vm11, %v307_v57 }
 0x118   : > { %v312_v58 = vpop.permute.xlu0 %311 }
 0x1cf   : > { %v389_v59 = vpop.f32.mrf.mxu0 }
 0x1d0   : > { %v390_v60 = vadd.f32 %v389_v59, %v312_v58 }
 0x1d1   : > { %v391_v61 = vpop.f32.mrf.mxu0 }
 0x1d2   : > { %v394_v62 = vmax.f32 %v390_v60, 0.0  ;;  %v392_v63 = vadd.f32 %v391_v61, %v312_v58 }
 0x1d4   : > { %396 = vst [vmem:[%s170_s4] sm:$0xff] %v394_v62  ;;  %v395_v0 = vmax.f32 %v392_v63, 0.0 }
 0x1d6   : > { %397 = vst [vmem:[%s170_s4 + $0x8] sm:$0xff] %v395_v0 }
 0x1d7 PF: > { %s13_s12 = sadd.s32 1, %s494_s12  }
 0x1d8   : > { %p10_p4 = scmp.ge.s32.totalorder %s13_s12, 4  }
 0x1da   :  { %12 = sbr.rel (!%p10_p4) target bundleno = 1 (0x1), region = 62 }

</bundles_post_ra>
